<compile_context>
chip_gen: v6e
topology: v6e:2x2x1
jax: 0.10.0
libtpu: 0.0.40
codegen_flags: <defaults>
</compile_context>

<pallas_src>
import functools

import jax
import jax.numpy as jnp
from jax import lax
from jax.experimental import pallas as pl
from jax.experimental.pallas import tpu as pltpu


# ----------------------------------------------------------------------------
# Kernel
# ----------------------------------------------------------------------------
def _sync_kernel(p_ik_ref, p_ki_ref, adj_ref, x_ref, o_ref):
    """One (i row-tile, j feature-tile, k reduction-tile) step.

    p_ik_ref: (tm, tk)  param block (i, k)          compute dtype
    p_ki_ref: (tk, tm)  param block (k, i)          compute dtype
    adj_ref : (tm, tk)  adj block (i, k)            int8 (binary) or compute dtype
    x_ref   : (tk, td)  x block (k, j)              compute dtype
    o_ref   : (tm, td)  f32 output block, revisited across k -> used as accumulator
    """
    k = pl.program_id(2)

    @pl.when(k == 0)
    def _():
        o_ref[...] = jnp.zeros_like(o_ref)

    p_ik = p_ik_ref[...]                                  # (tm, tk)
    p_ki = p_ki_ref[...]                                  # (tk, tm)
    # XLU transpose: free filler relative to the DMA/MXU slots in this
    # bandwidth-bound regime.  Elementwise math stays in the operand dtype
    # (no f32 full-block temporaries -> smaller VMEM footprint on v7x).
    sym = (p_ik + p_ki.T) * 0.5                           # (tm, tk)
    p_new = sym * adj_ref[...].astype(sym.dtype)          # mask (int8 -> operand dtype)

    o_ref[...] += jnp.dot(p_new, x_ref[...], preferred_element_type=jnp.float32)

    @pl.when(k == pl.num_programs(2) - 1)
    def _():
        o_ref[...] = jnp.maximum(o_ref[...], 0.0)


# ----------------------------------------------------------------------------
# Wrapper helpers
# ----------------------------------------------------------------------------
def _round_up(v, m):
    return (v + m - 1) // m * m


def _pick_tile(n, target):
    """Largest multiple of 128 that divides n and is <= target.

    n must already be a multiple of 128 (we pad in the wrapper), so this
    always returns a value in [128, n] - no silent full-extent fallback.
    """
    t = min(target, n)
    t -= t % 128
    while t > 128 and n % t != 0:
        t -= 128
    t = max(t, 128)
    return t if n % t == 0 else n


def _vmem_limit_bytes():
    """~3/4 of physical VMEM (larger tiles on v5e/v6e, safe on v7x's 64 MiB)."""
    try:
        cap = pltpu.get_tpu_info().vmem_capacity_bytes
        return int(cap * 3 // 4)
    except Exception:
        return 48 * 1024 * 1024


# ----------------------------------------------------------------------------
# Wrapper
# ----------------------------------------------------------------------------
@functools.partial(
    jax.jit,
    static_argnames=("compute_dtype", "binary_adj", "tm", "tk", "td"))
def sync_module_forward(param, adj, x, *,
                        compute_dtype=jnp.bfloat16,
                        binary_adj=True,
                        tm=512, tk=1024, td=512):
    """relu(((param + param.T)/2 * adj) @ x) via a Pallas TPU kernel.

    compute_dtype: dtype of the elementwise math and MXU operands (accumulation
        is always f32).  bf16 (default) halves HBM traffic; pass jnp.float32
        for exact-f32 semantics matching the PyTorch module.
    binary_adj: stream adj as int8 (valid for 0/1 or small-integer masks, the
        normal adjacency usage); pass False for arbitrary float adj.
    tm, tk, td: row / reduction / feature tile targets (rounded to divisors).
    """
    n = param.shape[0]
    d = x.shape[-1]
    assert param.shape == (n, n) and adj.shape == (n, n) and x.shape == (n, d)

    out_dtype = jnp.float32  # matches the PyTorch module's f32 output

    # Pad N to a multiple of 128 so all blocks stay (8,128)/(32,128)-aligned.
    n_pad = _round_up(max(n, 128), 128)
    if n_pad != n:
        pad = n_pad - n
        param = jnp.pad(param, ((0, pad), (0, pad)))
        adj = jnp.pad(adj, ((0, pad), (0, pad)))
        x = jnp.pad(x, ((0, pad), (0, 0)))

    p_in = param.astype(compute_dtype)
    a_in = adj.astype(jnp.int8) if binary_adj else adj.astype(compute_dtype)
    x_in = x.astype(compute_dtype)

    # Tile selection: tm capped at N/2 so the parallel row axis has >=2 blocks
    # (keeps both v7x TensorCores fed); tk as large as possible (fewer grid
    # steps / less per-step overhead); D tiled only when wide & 128-aligned.
    tm_target = min(tm, n_pad // 2) if n_pad >= 256 else n_pad
    tm_ = _pick_tile(n_pad, max(tm_target, 128))
    tk_ = _pick_tile(n_pad, tk)
    if d % 128 == 0 and d > td:
        td_ = _pick_tile(d, td)
    else:
        td_ = d  # full feature extent (legal block dim even if not 128-aligned)

    grid = (n_pad // tm_, d // td_, n_pad // tk_)  # (i, j, k) - k innermost

    out = pl.pallas_call(
        _sync_kernel,
        out_shape=jax.ShapeDtypeStruct((n_pad, d), out_dtype),
        grid_spec=pltpu.PrefetchScalarGridSpec(
            num_scalar_prefetch=0,
            grid=grid,
            in_specs=[
                pl.BlockSpec((tm_, tk_), lambda i, j, k: (i, k)),  # P[i, k]
                pl.BlockSpec((tk_, tm_), lambda i, j, k: (k, i)),  # P[k, i]
                pl.BlockSpec((tm_, tk_), lambda i, j, k: (i, k)),  # A[i, k]
                pl.BlockSpec((tk_, td_), lambda i, j, k: (k, j)),  # x[k, j]
            ],
            out_specs=pl.BlockSpec((tm_, td_), lambda i, j, k: (i, j)),
        ),
        compiler_params=pltpu.CompilerParams(
            dimension_semantics=("parallel", "parallel", "arbitrary"),
            vmem_limit_bytes=_vmem_limit_bytes()),
    )(p_in, p_in, a_in, x_in)

    return out[:n] if n_pad != n else out


# ----------------------------------------------------------------------------
# Demo / self-check
# ----------------------------------------------------------------------------
def _reference(param, adj, x):
    sym = (param + param.T) * 0.5
    return jnp.maximum(
        jnp.matmul(sym * adj, x, precision=lax.Precision.HIGHEST), 0.0)


def _make_inputs(n, d, key):
    k_param, k_adj, k_x = jax.random.split(key, 3)
    # Deterministic xavier_uniform_-style init: bound = sqrt(6 / (fan_in + fan_out)).
    bound = (6.0 / (n + n)) ** 0.5
    param = jax.random.uniform(k_param, (n, n), jnp.float32, -bound, bound)
    adj_raw = (jax.random.uniform(k_adj, (n, n)) < 0.3).astype(jnp.float32)
    adj = jnp.maximum(adj_raw, adj_raw.T)  # symmetric 0/1 adjacency (typical usage)
    x = jax.random.normal(k_x, (n, d), jnp.float32)
    return param, adj, x


if __name__ == "__main__":
    key = jax.random.PRNGKey(0)
    k_a, k_b, k_c = jax.random.split(key, 3)

    # 1) Small shape (N=256, D=128), exact f32 compute path.
    p, a, x = _make_inputs(256, 128, k_a)
    ref = _reference(p, a, x)
    out_f32 = jax.block_until_ready(
        sync_module_forward(p, a, x, compute_dtype=jnp.float32))
    assert out_f32.shape == ref.shape
    assert jnp.allclose(out_f32, ref, atol=5e-3, rtol=5e-3), "f32 path mismatch"

    # 2) Same shape, default bf16 operands (relaxed tolerance).
    out_bf16 = jax.block_until_ready(sync_module_forward(p, a, x))
    assert jnp.allclose(out_bf16, ref, atol=3e-2, rtol=3e-2), "bf16 path mismatch"

    # 3) Larger shape (N=1024, D=128): multi-tile grid with a real k reduction
    #    (tm=256, tk=512 -> grid (4, 1, 2)).
    p, a, x = _make_inputs(1024, 128, k_b)
    ref = _reference(p, a, x)
    out_tiled = jax.block_until_ready(
        sync_module_forward(p, a, x, tm=256, tk=512))
    assert jnp.allclose(out_tiled, ref, atol=3e-2, rtol=3e-2), "tiled mismatch"

    # 4) Non-128-aligned shape (N=200, D=96): exercises the padding path and
    #    the non-binary-adj (float) adjacency stream, exact f32 compute.
    p, a, x = _make_inputs(200, 96, k_c)
    ref = _reference(p, a, x)
    out_pad = jax.block_until_ready(
        sync_module_forward(p, a, x, compute_dtype=jnp.float32,
                            binary_adj=False))
    assert out_pad.shape == ref.shape
    assert jnp.allclose(out_pad, ref, atol=5e-3, rtol=5e-3), "padded mismatch"

    print("KERNEL_OK")
</pallas_src>

<mosaic_0001>
module attributes {stable_mosaic.version = 11 : i64} {
  func.func @_sync_kernel(%arg0: i32, %arg1: i32, %arg2: i32, %arg3: memref<128x256xf32, #tpu.memory_space<vmem>>, %arg4: memref<256x128xf32, #tpu.memory_space<vmem>>, %arg5: memref<128x256xi8, #tpu.memory_space<vmem>>, %arg6: memref<256x128xf32, #tpu.memory_space<vmem>>, %arg7: memref<128x128xf32, #tpu.memory_space<vmem>>) attributes {dimension_semantics = [#tpu.dimension_semantics<parallel>, #tpu.dimension_semantics<parallel>, #tpu.dimension_semantics<arbitrary>], iteration_bounds = array<i64: 2, 1, 1>, scalar_prefetch = 0 : i64, scratch_operands = 0 : i64, tpu.core_type = #tpu.core_type<tc>, window_params = [{transform_indices = @transform_0, window_bounds = array<i64: 128, 256>}, {transform_indices = @transform_1, window_bounds = array<i64: 256, 128>}, {transform_indices = @transform_2, window_bounds = array<i64: 128, 256>}, {transform_indices = @transform_3, window_bounds = array<i64: 256, 128>}, {transform_indices = @transform_4, window_bounds = array<i64: 128, 128>}]} {
    %c0_i32 = arith.constant 0 : i32
    %0 = arith.cmpi eq, %arg2, %c0_i32 : i32
    %1 = arith.extui %0 : i1 to i32
    %c0_i32_0 = arith.constant 0 : i32
    %2 = arith.cmpi ne, %1, %c0_i32_0 : i32
    scf.if %2 {
      %cst_15 = arith.constant 0.000000e+00 : f32
      %20 = vector.broadcast %cst_15 : f32 to vector<128x128xf32>
      %c0_16 = arith.constant 0 : index
      %c0_17 = arith.constant 0 : index
      %21 = vector.load %arg7[%c0_16, %c0_17] : memref<128x128xf32, #tpu.memory_space<vmem>>, vector<128x128xf32>
      tpu.vector_store %arg7[%c0_16, %c0_17], %20 {strides = array<i32>} : memref<128x128xf32, #tpu.memory_space<vmem>>, vector<128x128xf32>,
    } else {
    }
    %c0 = arith.constant 0 : index
    %c0_1 = arith.constant 0 : index
    %3 = vector.load %arg3[%c0, %c0_1] : memref<128x256xf32, #tpu.memory_space<vmem>>, vector<128x256xf32>
    %c0_2 = arith.constant 0 : index
    %c0_3 = arith.constant 0 : index
    %4 = vector.load %arg4[%c0_2, %c0_3] : memref<256x128xf32, #tpu.memory_space<vmem>>, vector<256x128xf32>
    %5 = tpu.transpose %4, [1, 0] : vector<256x128xf32> -> vector<128x256xf32>
    %6 = arith.addf %3, %5 : vector<128x256xf32>
    %cst = arith.constant 5.000000e-01 : f32
    %7 = vector.broadcast %cst : f32 to vector<128x256xf32>
    %8 = arith.mulf %6, %7 : vector<128x256xf32>
    %c0_4 = arith.constant 0 : index
    %c0_5 = arith.constant 0 : index
    %9 = vector.load %arg5[%c0_4, %c0_5] : memref<128x256xi8, #tpu.memory_space<vmem>>, vector<128x256xi8>
    %10 = arith.sitofp %9 : vector<128x256xi8> to vector<128x256xf32>
    %11 = arith.mulf %8, %10 : vector<128x256xf32>
    %c0_6 = arith.constant 0 : index
    %c0_7 = arith.constant 0 : index
    %12 = vector.load %arg7[%c0_6, %c0_7] : memref<128x128xf32, #tpu.memory_space<vmem>>, vector<128x128xf32>
    %c0_8 = arith.constant 0 : index
    %c0_9 = arith.constant 0 : index
    %13 = vector.load %arg6[%c0_8, %c0_9] : memref<256x128xf32, #tpu.memory_space<vmem>>, vector<256x128xf32>
    %cst_10 = arith.constant dense<0.000000e+00> : vector<128x128xf32>
    %14 = tpu.matmul %11, %13, %cst_10 {dimension_numbers = #tpu.dot_dimension_numbers<[1], [0], [0], [1], [0, 0, 1, 1], [], []>} : vector<128x256xf32>, vector<256x128xf32>, vector<128x128xf32> -> vector<128x128xf32>
    %15 = arith.addf %12, %14 : vector<128x128xf32>
    %c0_11 = arith.constant 0 : index
    %c0_12 = arith.constant 0 : index
    %16 = vector.load %arg7[%c0_11, %c0_12] : memref<128x128xf32, #tpu.memory_space<vmem>>, vector<128x128xf32>
    tpu.vector_store %arg7[%c0_11, %c0_12], %15 {strides = array<i32>} : memref<128x128xf32, #tpu.memory_space<vmem>>, vector<128x128xf32>,
    %c0_i32_13 = arith.constant 0 : i32
    %17 = arith.cmpi eq, %arg2, %c0_i32_13 : i32
    %18 = arith.extui %17 : i1 to i32
    %c0_i32_14 = arith.constant 0 : i32
    %19 = arith.cmpi ne, %18, %c0_i32_14 : i32
    scf.if %19 {
      %c0_15 = arith.constant 0 : index
      %c0_16 = arith.constant 0 : index
      %20 = vector.load %arg7[%c0_15, %c0_16] : memref<128x128xf32, #tpu.memory_space<vmem>>, vector<128x128xf32>
      %cst_17 = arith.constant 0.000000e+00 : f32
      %21 = vector.broadcast %cst_17 : f32 to vector<128x128xf32>
      %22 = arith.maximumf %20, %21 : vector<128x128xf32>
      %c0_18 = arith.constant 0 : index
      %c0_19 = arith.constant 0 : index
      %23 = vector.load %arg7[%c0_18, %c0_19] : memref<128x128xf32, #tpu.memory_space<vmem>>, vector<128x128xf32>
      tpu.vector_store %arg7[%c0_18, %c0_19], %22 {strides = array<i32>} : memref<128x128xf32, #tpu.memory_space<vmem>>, vector<128x128xf32>,
    } else {
    }
    return
  }
  func.func @transform_0(%arg0: i32, %arg1: i32, %arg2: i32) -> (i32, i32) {
    %c0_i32 = arith.constant 0 : i32
    return %arg0, %arg2 : i32, i32
  }
  func.func @transform_1(%arg0: i32, %arg1: i32, %arg2: i32) -> (i32, i32) {
    %c0_i32 = arith.constant 0 : i32
    return %arg2, %arg0 : i32, i32
  }
  func.func @transform_2(%arg0: i32, %arg1: i32, %arg2: i32) -> (i32, i32) {
    %c0_i32 = arith.constant 0 : i32
    return %arg0, %arg2 : i32, i32
  }
  func.func @transform_3(%arg0: i32, %arg1: i32, %arg2: i32) -> (i32, i32) {
    %c0_i32 = arith.constant 0 : i32
    return %arg2, %arg1 : i32, i32
  }
  func.func @transform_4(%arg0: i32, %arg1: i32, %arg2: i32) -> (i32, i32) {
    %c0_i32 = arith.constant 0 : i32
    return %arg0, %arg1 : i32, i32
  }
}

</mosaic_0001>

<bundles_post_ra>
// kernel: sync_module_forward.1
= control target key start
LH: loop header
LB: loop body
LE: loop exit
PB: predicated region body
PF: predicated region fallthrough
CT: control target
= control target key end

     0   :  { %9 = vsyncpa [#allocation4], 0  ;;  %s1940_s0 = inlined_call_operand.vmem [shape: f32[256,256], index: 0, kind: input, shape index: {}, may-alias: {0,1}]   ;;  %s1941_s1 = inlined_call_operand.vmem [shape: f32[256,256], index: 1, kind: input, shape index: {}, may-alias: {0,1}]   ;;  %s1942_s2 = inlined_call_operand.vmem [shape: s8[256,256], index: 2, kind: input, shape index: {}]   ;;  %s1943_s3 = inlined_call_operand.hbm [shape: f32[256,128], index: 3, kind: input, shape index: {}]   ;;  %s1944_s4 = inlined_call_operand.hbm [shape: f32[256,128], index: 4, kind: output, shape index: {}]  }
   0x1   :  { %10 = vsyncpa [#allocation5], 0 }
   0x2   :  { %12 = vsyncpa [#allocation5 + $0x1], 0  ;;  %s1581_s15 = smov 0   ;;  %s1583_s16 = smov 0  }
   0x3   :  { %s1585_s17 = smov 0   ;;  %s1587_s18 = smov 0  }
   0x4   :  { %s1589_s19 = smov 0   ;;  %s1591_s20 = smov 0  }
   0x5 LB: > { %s1234_s21 = sadd.s32 4294967295, %s1548_s20   ;;  %s1235_s22 = sadd.s32 4294967294, %s1548_s20   ;;  %s1548_s20 = sphi %s1591_s20, %s18_s20   ;;  %s1544_s19 = sphi %s1589_s19, %s1957_s19   ;;  %s1540_s18 = sphi %s1587_s18, %s1956_s18   ;;  %s1536_s17 = sphi %s1585_s17, %s1955_s17   ;;  %s1532_s16 = sphi %s1583_s16, %s1954_s16   ;;  %s1528_s15 = sphi %s1581_s15, %s1953_s15  }
   0x6   : > { %s37_s23 = sadd.s32 1, %s1544_s19  ;;  %s74_s24 = sadd.s32 1, %s1536_s17 }
   0x7   : > { %p39_p0 = scmp.ge.s32.totalorder %s37_s23, 2  ;;  %p81_p1 = scmp.ne.s32.totalorder %s1536_s17, %s1532_s16 }
   0x8   : > { %p82_p2 = scmp.eq.s32.totalorder %s1548_s20, 0  ;;  %p169_p3 = scmp.eq.s32.totalorder %s1234_s21, 1 }
   0x9   : > { %s1959_s23 = smov (%p39_p0, %s37_s23), 0  ;;  %p174_p6 = scmp.ne.s32.totalorder %s1532_s16, %s1528_s15 }
   0xa   : > { %p1620_p4 = por %p82_p2, %p81_p1  ;;  %p1624_p5 = por %p169_p3, %p81_p1 }
   0xb   : > { %s70_s27 = ssub.s32 %s1544_s19, %s1959_s23  ;;  %p175_p8 = scmp.eq.s32.totalorder %s1235_s22, 1 }
   0xc   : > { %s1947_s26 = scalar_select %p1624_p5, 1, 0 }
   0xd   : > { %p72_p7 = scmp.eq.s32.totalorder %s70_s27, 0  ;;  %p1236_p9 = scmp.ge.s32.totalorder %s1548_s20, 1 }
   0xe   : > { %p182_p10 = scmp.lt.s32.totalorder %s1548_s20, 3  ;;  %p1637_p11 = por %p175_p8, %p174_p6 }
   0xf   : > { %s1635_s28 = scalar_select %p72_p7, %s1536_s17, %s74_s24  }
  0x10   : > { %s1948_s29 = scalar_select %p1637_p11, 1, 0 }
  0x11   : > { %p1641_p12 = pnand %p1236_p9, %p182_p10  ;;  %p1645_p13 = scmp.eq.s32.totalorder %s1234_s21, 0 }
  0x12   : > { %s1550_s6 = smov [#allocation3]  }
  0x13   : > { %p1377_p0 = pneg %p1641_p12  ;;  %s198_s7 = sshll.u32 %s1550_s6, 4  ;;  %s199_s7 = int_to_ptr.vmem [resolvable:$true] %s198_s7 }
  0x14   : > { %s1453_s8 = scalar_lea.vmem %s199_s7, 4096  ;;  %p1461_p8 = scmp.lt.s32.totalorder %s199_s7, %s199_s7 }
  0x15   : > { %p1378_p1 = pnand %p1645_p13, %p1377_p0  ;;  %p1454_p3 = scmp.ne.s32.totalorder %s199_s7, %s1453_s8 }
  0x16   : > { %p1462_p9 = scmp.lt.s32.totalorder %s1453_s8, %s1453_s8 }
  0x17   : > { %p1444_p2 = pneg %p1378_p1 }
  0x18   : > { %p1463_p10 = por %p1462_p9, %p1461_p8 }
  0x19   : > { %p1456_p6 = pnand %p1454_p3, %p1444_p2 }
  0x1b   : > { %p1457_p7 = pneg %p1456_p6 }
  0x1d   : > { %p1464_p11 = pnand %p1463_p10, %p1457_p7 }
  0x1f   : > { %1467 = shalt.err (!%p1464_p11)
}
  0x20   : > { %s1551_s9 = smov 128   ;;  %s1552_s10 = smov 8  }
  0x21   : > { %1380 = dma.hbm_to_vmem [thread:$0]  (!%p1378_p1), %s1943_s3, 4096, %s199_s7, [#allocation4], %s1551_s9, %s1551_s9, %s1552_s10  }
  0x22   : > { %p1238_p5 = scmp.ge.s32.totalorder %s1548_s20, 2 }
  0x24   : > { %208 = sbr.rel (%p1238_p5) target bundleno = 61 (0x3d), region = 20 }
  0x29   : > { %226 = sbr.rel (!%p1620_p4) target bundleno = 61 (0x3d), region = 28  ;;  %s228_s13 = sand.u32 (%p1620_p4), 1, %s1536_s17  }
  0x2a   : > { %s1240_s14 = sshll.u32 (%p1620_p4), %s1544_s19, 3  ;;  %s1239_s21 = sshll.u32 (%p1620_p4), %s228_s13, 8 }
  0x2b   : > { %s1666_s27 = scalar_lea.vmem (%p1620_p4), %s1941_s1, %s1240_s14  ;;  %s1671_s25 = scalar_lea.vmem (%p1620_p4), [#allocation2], %s1239_s21 }
  0x2c   : > { %v326_v0 = vld [vmem:[%s1666_s27] sm:$0xff] (%p1620_p4)  ;;  %v328_v1 = vld [vmem:[%s1666_s27 + $0x10] sm:$0xff] (%p1620_p4) }
  0x2d   : > { %v330_v2 = vld [vmem:[%s1666_s27 + $0x20] sm:$0xff] (%p1620_p4)  ;;  %327 = vst [vmem:[%s1671_s25] sm:$0xff] (%p1620_p4), %v326_v0  ;;  %329 = vst [vmem:[%s1671_s25 + $0x8] sm:$0xff] (%p1620_p4), %v328_v1  ;;  %v332_v3 = vld [vmem:[%s1666_s27 + $0x30] sm:$0xff] (%p1620_p4) }
  0x2e   : > { %331 = vst [vmem:[%s1671_s25 + $0x10] sm:$0xff] %v330_v2  ;;  %v334_v4 = vld [vmem:[%s1666_s27 + $0x40] sm:$0xff]  ;;  %v336_v5 = vld [vmem:[%s1666_s27 + $0x50] sm:$0xff]  ;;  %333 = vst [vmem:[%s1671_s25 + $0x18] sm:$0xff] %v332_v3 }
  0x2f   : > { %335 = vst [vmem:[%s1671_s25 + $0x20] sm:$0xff] %v334_v4  ;;  %337 = vst [vmem:[%s1671_s25 + $0x28] sm:$0xff] %v336_v5  ;;  %v338_v6 = vld [vmem:[%s1666_s27 + $0x60] sm:$0xff]  ;;  %v340_v7 = vld [vmem:[%s1666_s27 + $0x70] sm:$0xff] }
  0x30   : > { %v342_v8 = vld [vmem:[%s1666_s27 + $0x80] sm:$0xff]  ;;  %339 = vst [vmem:[%s1671_s25 + $0x30] sm:$0xff] %v338_v6  ;;  %341 = vst [vmem:[%s1671_s25 + $0x38] sm:$0xff] %v340_v7  ;;  %v344_v9 = vld [vmem:[%s1666_s27 + $0x90] sm:$0xff] }
  0x31   : > { %343 = vst [vmem:[%s1671_s25 + $0x40] sm:$0xff] %v342_v8  ;;  %v346_v10 = vld [vmem:[%s1666_s27 + $0xa0] sm:$0xff]  ;;  %v348_v11 = vld [vmem:[%s1666_s27 + $0xb0] sm:$0xff]  ;;  %345 = vst [vmem:[%s1671_s25 + $0x48] sm:$0xff] %v344_v9 }
  0x32   : > { %347 = vst [vmem:[%s1671_s25 + $0x50] sm:$0xff] %v346_v10  ;;  %349 = vst [vmem:[%s1671_s25 + $0x58] sm:$0xff] %v348_v11  ;;  %v350_v12 = vld [vmem:[%s1666_s27 + $0xc0] sm:$0xff]  ;;  %v352_v13 = vld [vmem:[%s1666_s27 + $0xd0] sm:$0xff] }
  0x33   : > { %v354_v14 = vld [vmem:[%s1666_s27 + $0xe0] sm:$0xff]  ;;  %351 = vst [vmem:[%s1671_s25 + $0x60] sm:$0xff] %v350_v12  ;;  %353 = vst [vmem:[%s1671_s25 + $0x68] sm:$0xff] %v352_v13  ;;  %v356_v15 = vld [vmem:[%s1666_s27 + $0xf0] sm:$0xff] }
  0x34   : > { %355 = vst [vmem:[%s1671_s25 + $0x70] sm:$0xff] %v354_v14  ;;  %v358_v16 = vld [vmem:[%s1666_s27 + $0x100] sm:$0xff]  ;;  %v360_v17 = vld [vmem:[%s1666_s27 + $0x110] sm:$0xff]  ;;  %357 = vst [vmem:[%s1671_s25 + $0x78] sm:$0xff] %v356_v15 }
  0x35   : > { %359 = vst [vmem:[%s1671_s25 + $0x80] sm:$0xff] %v358_v16  ;;  %361 = vst [vmem:[%s1671_s25 + $0x88] sm:$0xff] %v360_v17  ;;  %v362_v18 = vld [vmem:[%s1666_s27 + $0x120] sm:$0xff]  ;;  %v364_v19 = vld [vmem:[%s1666_s27 + $0x130] sm:$0xff] }
  0x36   : > { %v366_v20 = vld [vmem:[%s1666_s27 + $0x140] sm:$0xff]  ;;  %363 = vst [vmem:[%s1671_s25 + $0x90] sm:$0xff] %v362_v18  ;;  %365 = vst [vmem:[%s1671_s25 + $0x98] sm:$0xff] %v364_v19  ;;  %v368_v21 = vld [vmem:[%s1666_s27 + $0x150] sm:$0xff] }
  0x37   : > { %367 = vst [vmem:[%s1671_s25 + $0xa0] sm:$0xff] %v366_v20  ;;  %v370_v22 = vld [vmem:[%s1666_s27 + $0x160] sm:$0xff]  ;;  %v372_v23 = vld [vmem:[%s1666_s27 + $0x170] sm:$0xff]  ;;  %369 = vst [vmem:[%s1671_s25 + $0xa8] sm:$0xff] %v368_v21 }
  0x38   : > { %371 = vst [vmem:[%s1671_s25 + $0xb0] sm:$0xff] %v370_v22  ;;  %373 = vst [vmem:[%s1671_s25 + $0xb8] sm:$0xff] %v372_v23  ;;  %v374_v24 = vld [vmem:[%s1666_s27 + $0x180] sm:$0xff]  ;;  %v376_v25 = vld [vmem:[%s1666_s27 + $0x190] sm:$0xff] }
  0x39   : > { %v378_v26 = vld [vmem:[%s1666_s27 + $0x1a0] sm:$0xff]  ;;  %375 = vst [vmem:[%s1671_s25 + $0xc0] sm:$0xff] %v374_v24  ;;  %377 = vst [vmem:[%s1671_s25 + $0xc8] sm:$0xff] %v376_v25  ;;  %v380_v27 = vld [vmem:[%s1666_s27 + $0x1b0] sm:$0xff] }
  0x3a   : > { %379 = vst [vmem:[%s1671_s25 + $0xd0] sm:$0xff] %v378_v26  ;;  %v382_v28 = vld [vmem:[%s1666_s27 + $0x1c0] sm:$0xff]  ;;  %v384_v29 = vld [vmem:[%s1666_s27 + $0x1d0] sm:$0xff]  ;;  %381 = vst [vmem:[%s1671_s25 + $0xd8] sm:$0xff] %v380_v27 }
  0x3b   : > { %383 = vst [vmem:[%s1671_s25 + $0xe0] sm:$0xff] %v382_v28  ;;  %385 = vst [vmem:[%s1671_s25 + $0xe8] sm:$0xff] %v384_v29  ;;  %v386_v30 = vld [vmem:[%s1666_s27 + $0x1e0] sm:$0xff]  ;;  %v388_v31 = vld [vmem:[%s1666_s27 + $0x1f0] sm:$0xff] }
  0x3c   : > { %387 = vst [vmem:[%s1671_s25 + $0xf0] sm:$0xff] %v386_v30  ;;  %389 = vst [vmem:[%s1671_s25 + $0xf8] sm:$0xff] %v388_v31 }
  0x3d PF: > { %413 = sbr.rel (%p1641_p12) target bundleno = 473 (0x1d9), region = 70  ;;  %s1737_s6 = sand.u32 (!%p1641_p12), 1, %s1532_s16  }
  0x3e   : > { %s1242_s7 = sshll.u32 (!%p1641_p12), %s1737_s6, 8 }
  0x3f   : > { %s1740_s8 = scalar_lea.vmem (!%p1641_p12), [#allocation2], %s1242_s7 }
  0x42   : > { %1519 = dma.done.wait (%p1645_p13), [#allocation4], 4096  }
  0x43   : > { %1521 = vsyncadd (%p1645_p13), [#allocation4], 4294963200  ;;  %v560_v32 = vld [vmem:[%s1740_s8 + $0x80] sm:$0xff]  ;;  %v561_v34 = vld [vmem:[%s1740_s8 + $0x88] sm:$0xff]  ;;  %s1248_s30 = sshll.u32 %s1540_s18, 2  ;;  %s1245_s5 = sshll.u32 %s1540_s18, 4 }
  0x44   : > { %v544_v33 = vld [vmem:[%s1740_s8] sm:$0xff]  ;;  %608 = vxpose.xlu0.b32.start [1/16] %v560_v32, 128  ;;  %v545_v35 = vld [vmem:[%s1740_s8 + $0x8] sm:$0xff]  ;;  %v562_v36 = vld [vmem:[%s1740_s8 + $0x90] sm:$0xff]  ;;  %p480_p4 = scmp.lt.s32.totalorder %s1248_s30, 7  ;;  %p467_p11 = scmp.lt.s32.totalorder %s1245_s5, 31 }
  0x45   : > { %576 = vxpose.xlu1.b32.start [1/16] %v544_v33, 128  ;;  %v546_v37 = vld [vmem:[%s1740_s8 + $0x10] sm:$0xff]  ;;  %v563_v38 = vld [vmem:[%s1740_s8 + $0x98] sm:$0xff]  ;;  %v853_v44 = vld [vmem:[#allocation3 + $0xe8] sm:$0xff]  ;;  %s1244_s24 = sshll.u32 %s1737_s6, 7  ;;  %s1258_s25 = sshll.u32 %s1540_s18, 11 }
  0x46   : > { %v547_v39 = vld [vmem:[%s1740_s8 + $0x18] sm:$0xff]  ;;  %v854_v42 = vld [vmem:[#allocation3 + $0xf0] sm:$0xff]  ;;  %v564_v45 = vld [vmem:[%s1740_s8 + $0xa0] sm:$0xff]  ;;  %s1961_s30 = smov (!%p480_p4, %s1248_s30), 7  ;;  %s1963_s5 = smov (!%p467_p11, %s1245_s5), 31 }
  0x47   : > { %v855_v40 = vld [vmem:[#allocation3 + $0xf8] sm:$0xff]  ;;  %v838_v43 = vld [vmem:[#allocation3 + $0x70] sm:$0xff]  ;;  %v548_v46 = vld [vmem:[%s1740_s8 + $0x20] sm:$0xff]  ;;  %s1257_s9 = sshll.u32 %s1961_s30, 4  ;;  %s1256_s13 = sshll.u32 %s1963_s5, 4 }
  0x48   : > { %609 = vxpose.xlu0.b32.cont [2/16] %v561_v34, 128  ;;  %1259 = vmatprep.subr.mxu0 %v855_v40  ;;  %v839_v41 = vld [vmem:[#allocation3 + $0x78] sm:$0xff]  ;;  %v837_v47 = vld [vmem:[#allocation3 + $0x68] sm:$0xff]  ;;  %v852_v48 = vld [vmem:[#allocation3 + $0xe0] sm:$0xff]  ;;  %s1783_s12 = scalar_lea.vmem %s1942_s2, %s1257_s9  ;;  %s1790_s22 = scalar_lea.vmem %s1940_s0, %s1256_s13 }
  0x49   : > { %577 = vxpose.xlu1.b32.cont [2/16] %v545_v35, 128  ;;  %1339 = vmatprep.subr.mxu1 %v855_v40  ;;  %v836_v49 = vld [vmem:[#allocation3 + $0x60] sm:$0xff]  ;;  %v565_v50 = vld [vmem:[%s1740_s8 + $0xa8] sm:$0xff]  ;;  %v851_v52 = vld [vmem:[#allocation3 + $0xd8] sm:$0xff]  ;;  %s1867_s27 = scalar_lea.vmem [#allocation6], %s1244_s24  ;;  %s1889_s5 = scalar_lea.hbm %s1944_s4, %s1258_s25 }
  0x4a   : > { %1260 = vmatpush3.msra.mxu0 %v839_v41  ;;  %1355 = vmatpush3.msra.mxu1 %v839_v41  ;;  %v549_v51 = vld [vmem:[%s1740_s8 + $0x28] sm:$0xff]  ;;  %v835_v53 = vld [vmem:[#allocation3 + $0x58] sm:$0xff]  ;;  %v850_v54 = vld [vmem:[#allocation3 + $0xd0] sm:$0xff]  ;;  %s1099_s7 = sshll.u32 %s1867_s27, 4  ;;  %s1085_s9 = scalar_lea.sflag [#allocation5], %s1737_s6  ;;  %s1891_s7 = int_to_ptr.vmem [resolvable:$true] %s1099_s7 }
  0x4b   : > { %1261 = vmatprep.subr.mxu0 %v854_v42  ;;  %1340 = vmatprep.subr.mxu1 %v854_v42  ;;  %v566_v55 = vld [vmem:[%s1740_s8 + $0xb0] sm:$0xff]  ;;  %v849_v58 = vld [vmem:[#allocation3 + $0xc8] sm:$0xff]  ;;  %v567_v60 = vld [vmem:[%s1740_s8 + $0xb8] sm:$0xff]  ;;  %s1468_s10 = scalar_lea.vmem %s1891_s7, 2048  ;;  %p1951_p13 = scmp.ne.s32.totalorder %s1947_s26, 0 }
  0x4c   : > { %610 = vxpose.xlu0.b32.cont [3/16] %v562_v36, 128  ;;  %1262 = vmatpush3.msra.mxu0 %v838_v43  ;;  %v550_v56 = vld [vmem:[%s1740_s8 + $0x30] sm:$0xff]  ;;  %v833_v59 = vld [vmem:[#allocation3 + $0x48] sm:$0xff]  ;;  %v551_v61 = vld [vmem:[%s1740_s8 + $0x38] sm:$0xff]  ;;  %p1469_p12 = scmp.ne.s32.totalorder %s1891_s7, %s1468_s10  ;;  %s1553_s18 = smov [#allocation6]  }
  0x4d   : > { %578 = vxpose.xlu1.b32.cont [3/16] %v546_v37, 128  ;;  %1356 = vmatpush3.msra.mxu1 %v838_v43  ;;  %v834_v57 = vld [vmem:[#allocation3 + $0x50] sm:$0xff]  ;;  %v848_v62 = vld [vmem:[#allocation3 + $0xc0] sm:$0xff]  ;;  %v847_v0 = vld [vmem:[#allocation3 + $0xb8] sm:$0xff]  ;;  %s1472_s11 = sshll.u32 %s1553_s18, 4  ;;  %s1473_s11 = int_to_ptr.vmem [resolvable:$false] %s1472_s11 }
  0x4e   : > { %1263 = vmatprep.subr.mxu0 %v853_v44  ;;  %1341 = vmatprep.subr.mxu1 %v853_v44  ;;  %v832_v63 = vld [vmem:[#allocation3 + $0x40] sm:$0xff]  ;;  %v831_v3 = vld [vmem:[#allocation3 + $0x38] sm:$0xff]  ;;  %v846_v4 = vld [vmem:[#allocation3 + $0xb0] sm:$0xff]  ;;  %p1470_p0 = pnand %p1469_p12, %p1951_p13  ;;  %p1475_p2 = scmp.lt.s32.totalorder %s1891_s7, %s1473_s11 }
  0x4f   : > { %1264 = vmatpush3.msra.mxu0 %v837_v47  ;;  %1357 = vmatpush3.msra.mxu1 %v837_v47  ;;  %v568_v1 = vld [vmem:[%s1740_s8 + $0xc0] sm:$0xff]  ;;  %v830_v5 = vld [vmem:[#allocation3 + $0x30] sm:$0xff]  ;;  %v569_v6 = vld [vmem:[%s1740_s8 + $0xc8] sm:$0xff] }
  0x50   : > { %611 = vxpose.xlu0.b32.cont [4/16] %v563_v38, 128  ;;  %1265 = vmatprep.subr.mxu0 %v852_v48  ;;  %v552_v2 = vld [vmem:[%s1740_s8 + $0x40] sm:$0xff]  ;;  %v553_v7 = vld [vmem:[%s1740_s8 + $0x48] sm:$0xff]  ;;  %v570_v11 = vld [vmem:[%s1740_s8 + $0xd0] sm:$0xff]  ;;  %p1471_p1 = pneg %p1470_p0 }
  0x51   : > { %579 = vxpose.xlu1.b32.cont [4/16] %v547_v39, 128  ;;  %1342 = vmatprep.subr.mxu1 %v852_v48  ;;  %v845_v8 = vld [vmem:[#allocation3 + $0xa8] sm:$0xff]  ;;  %v844_v10 = vld [vmem:[#allocation3 + $0xa0] sm:$0xff]  ;;  %v554_v12 = vld [vmem:[%s1740_s8 + $0x50] sm:$0xff] }
  0x52   : > { %1266 = vmatpush3.msra.mxu0 %v836_v49  ;;  %1358 = vmatpush3.msra.mxu1 %v836_v49  ;;  %v829_v9 = vld [vmem:[#allocation3 + $0x28] sm:$0xff]  ;;  %v828_v13 = vld [vmem:[#allocation3 + $0x20] sm:$0xff]  ;;  %v843_v14 = vld [vmem:[#allocation3 + $0x98] sm:$0xff] }
  0x53   : > { %1267 = vmatprep.subr.mxu0 %v851_v52  ;;  %1343 = vmatprep.subr.mxu1 %v851_v52  ;;  %v827_v15 = vld [vmem:[#allocation3 + $0x18] sm:$0xff]  ;;  %v842_v18 = vld [vmem:[#allocation3 + $0x90] sm:$0xff]  ;;  %v841_v20 = vld [vmem:[#allocation3 + $0x88] sm:$0xff] }
  0x54   : > { %612 = vxpose.xlu0.b32.cont [5/16] %v564_v45, 128  ;;  %1268 = vmatpush3.msra.mxu0 %v835_v53  ;;  %v571_v16 = vld [vmem:[%s1740_s8 + $0xd8] sm:$0xff]  ;;  %v826_v19 = vld [vmem:[#allocation3 + $0x10] sm:$0xff]  ;;  %v572_v21 = vld [vmem:[%s1740_s8 + $0xe0] sm:$0xff] }
  0x55   : > { %580 = vxpose.xlu1.b32.cont [5/16] %v548_v46, 128  ;;  %1359 = vmatpush3.msra.mxu1 %v835_v53  ;;  %v555_v17 = vld [vmem:[%s1740_s8 + $0x58] sm:$0xff]  ;;  %v556_v22 = vld [vmem:[%s1740_s8 + $0x60] sm:$0xff]  ;;  %v825_v23 = vld [vmem:[#allocation3 + $0x8] sm:$0xff] }
  0x56   : > { %1269 = vmatprep.subr.mxu0 %v850_v54  ;;  %1344 = vmatprep.subr.mxu1 %v850_v54  ;;  %v840_v24 = vld [vmem:[#allocation3 + $0x80] sm:$0xff]  ;;  %v573_v26 = vld [vmem:[%s1740_s8 + $0xe8] sm:$0xff]  ;;  %v574_v28 = vld [vmem:[%s1740_s8 + $0xf0] sm:$0xff] }
  0x57   : > { %1270 = vmatpush3.msra.mxu0 %v834_v57  ;;  %1360 = vmatpush3.msra.mxu1 %v834_v57  ;;  %v824_v25 = vld [vmem:[#allocation3] sm:$0xff]  ;;  %v557_v27 = vld [vmem:[%s1740_s8 + $0x68] sm:$0xff]  ;;  %v558_v29 = vld [vmem:[%s1740_s8 + $0x70] sm:$0xff] }
  0x58   : > { %613 = vxpose.xlu0.b32.cont [6/16] %v565_v50, 128  ;;  %1271 = vmatprep.subr.mxu0 %v849_v58  ;;  %v575_v30 = vld [vmem:[%s1740_s8 + $0xf8] sm:$0xff]  ;;  %v704_v32 = vld [vmem:[%s1783_s12] sm:$0xff]  ;;  %v705_v33 = vld [vmem:[%s1783_s12 + $0x8] sm:$0xff] }
  0x59   : > { %581 = vxpose.xlu1.b32.cont [6/16] %v549_v51, 128  ;;  %1345 = vmatprep.subr.mxu1 %v849_v58  ;;  %v559_v31 = vld [vmem:[%s1740_s8 + $0x78] sm:$0xff]  ;;  %v712_v34 = vunpack.c.0.s8 %v704_v32  ;;  %v713_v35 = vunpack.c.0.s8 %v705_v33  ;;  %v513_v36 = vld [vmem:[%s1790_s22 + $0x8] sm:$0xff]  ;;  %v512_v37 = vld [vmem:[%s1790_s22] sm:$0xff]  ;;  %v715_v40 = vunpack.c.1.s8 %v705_v33  ;;  %v714_v41 = vunpack.c.1.s8 %v704_v32 }
  0x5a   : > { %1272 = vmatpush3.msra.mxu0 %v833_v59  ;;  %1361 = vmatpush3.msra.mxu1 %v833_v59  ;;  %v515_v46 = vld [vmem:[%s1790_s22 + $0x18] sm:$0xff]  ;;  %v514_v47 = vld [vmem:[%s1790_s22 + $0x10] sm:$0xff]  ;;  %v717_v54 = vunpack.c.2.s8 %v705_v33 }
  0x5b   : > { %1273 = vmatprep.subr.mxu0 %v848_v62  ;;  %1346 = vmatprep.subr.mxu1 %v848_v62  ;;  %v744_v43 = vcvt.s32.f32 %v712_v34  ;;  %v745_v45 = vcvt.s32.f32 %v713_v35  ;;  %v747_v50 = vcvt.s32.f32 %v715_v40  ;;  %v746_v52 = vcvt.s32.f32 %v714_v41  ;;  %v523_v40 = vld [vmem:[%s1790_s22 + $0x58] sm:$0xff]  ;;  %v522_v41 = vld [vmem:[%s1790_s22 + $0x50] sm:$0xff] }
  0x5c   : > { %614 = vxpose.xlu0.b32.cont [7/16] %v566_v55, 128  ;;  %1274 = vmatpush3.msra.mxu0 %v832_v63  ;;  %v716_v55 = vunpack.c.2.s8 %v704_v32 }
  0x5d   : > { %582 = vxpose.xlu1.b32.cont [7/16] %v550_v56, 128  ;;  %1362 = vmatpush3.msra.mxu1 %v832_v63 }
  0x5e   : > { %1275 = vmatprep.subr.mxu0 %v847_v0  ;;  %1347 = vmatprep.subr.mxu1 %v847_v0  ;;  %v749_v0 = vcvt.s32.f32 %v717_v54  ;;  %v525_v54 = vld [vmem:[%s1790_s22 + $0x68] sm:$0xff] }
  0x5f   : > { %1276 = vmatpush3.msra.mxu0 %v831_v3  ;;  %1363 = vmatpush3.msra.mxu1 %v831_v3 }
  0x60   : > { %615 = vxpose.xlu0.b32.cont [8/16] %v567_v60, 128  ;;  %1277 = vmatprep.subr.mxu0 %v846_v4  ;;  %v517_v60 = vld [vmem:[%s1790_s22 + $0x28] sm:$0xff] }
  0x61   : > { %583 = vxpose.xlu1.b32.cont [8/16] %v551_v61, 128  ;;  %1348 = vmatprep.subr.mxu1 %v846_v4  ;;  %v516_v61 = vld [vmem:[%s1790_s22 + $0x20] sm:$0xff]  ;;  %v719_v4 = vunpack.c.3.s8 %v705_v33 }
  0x62   : > { %1278 = vmatpush3.msra.mxu0 %v830_v5  ;;  %1364 = vmatpush3.msra.mxu1 %v830_v5  ;;  %v718_v5 = vunpack.c.3.s8 %v704_v32 }
  0x63   : > { %1279 = vmatprep.subr.mxu0 %v845_v8  ;;  %1349 = vmatprep.subr.mxu1 %v845_v8 }
  0x64   : > { %616 = vxpose.xlu0.b32.cont [9/16] %v568_v1, 128  ;;  %1280 = vmatpush3.msra.mxu0 %v829_v9 }
  0x65   : > { %584 = vxpose.xlu1.b32.cont [9/16] %v552_v2, 128  ;;  %1365 = vmatpush3.msra.mxu1 %v829_v9  ;;  %v748_v2 = vcvt.s32.f32 %v716_v55  ;;  %v524_v55 = vld [vmem:[%s1790_s22 + $0x60] sm:$0xff] }
  0x66   : > { %1281 = vmatprep.subr.mxu0 %v844_v10  ;;  %1350 = vmatprep.subr.mxu1 %v844_v10  ;;  %v1799_v10 = vld [vmem:[%s1783_s12 + $0x18] sm:$0xff] }
  0x67   : > { %1282 = vmatpush3.msra.mxu0 %v828_v13  ;;  %1366 = vmatpush3.msra.mxu1 %v828_v13  ;;  %v518_v13 = vld [vmem:[%s1790_s22 + $0x30] sm:$0xff]  ;;  %v723_v34 = vunpack.c.1.s8 %v1799_v10 }
  0x68   : > { %617 = vxpose.xlu0.b32.cont [10/16] %v569_v6, 128  ;;  %1283 = vmatprep.subr.mxu0 %v843_v14 }
  0x69   : > { %585 = vxpose.xlu1.b32.cont [10/16] %v553_v7, 128  ;;  %1351 = vmatprep.subr.mxu1 %v843_v14 }
  0x6a   : > { %1284 = vmatpush3.msra.mxu0 %v827_v15  ;;  %1367 = vmatpush3.msra.mxu1 %v827_v15 }
  0x6b   : > { %1285 = vmatprep.subr.mxu0 %v842_v18  ;;  %1352 = vmatprep.subr.mxu1 %v842_v18  ;;  %v750_v18 = vcvt.s32.f32 %v718_v5  ;;  %v1824_v5 = vld [vmem:[%s1783_s12 + $0x28] sm:$0xff] }
  0x6c   : > { %618 = vxpose.xlu0.b32.cont [11/16] %v570_v11, 128  ;;  %1286 = vmatpush3.msra.mxu0 %v826_v19  ;;  %v1802_v11 = vld [vmem:[%s1783_s12 + $0x10] sm:$0xff] }
  0x6d   : > { %586 = vxpose.xlu1.b32.cont [11/16] %v554_v12, 128  ;;  %1368 = vmatpush3.msra.mxu1 %v826_v19  ;;  %v519_v12 = vld [vmem:[%s1790_s22 + $0x38] sm:$0xff]  ;;  %v722_v35 = vunpack.c.1.s8 %v1802_v11 }
  0x6e   : > { %1287 = vmatprep.subr.mxu0 %v841_v20  ;;  %1353 = vmatprep.subr.mxu1 %v841_v20  ;;  %v721_v20 = vunpack.c.0.s8 %v1799_v10 }
  0x6f   : > { %1288 = vmatpush3.msra.mxu0 %v825_v23  ;;  %1369 = vmatpush3.msra.mxu1 %v825_v23 }
  0x70   : > { %619 = vxpose.xlu0.b32.cont [12/16] %v571_v16, 128  ;;  %1289 = vmatprep.subr.mxu0 %v840_v24  ;;  %v751_v16 = vcvt.s32.f32 %v719_v4  ;;  %v1821_v4 = vld [vmem:[%s1783_s12 + $0x20] sm:$0xff] }
  0x71   : > { %587 = vxpose.xlu1.b32.cont [12/16] %v555_v17, 128  ;;  %1354 = vmatprep.subr.mxu1 %v840_v24 }
  0x72   : > { %1290 = vmatpush3.msra.mxu0 %v824_v25  ;;  %1370 = vmatpush3.msra.mxu1 %v824_v25 }
  0x74   : > { %620 = vxpose.xlu0.b32.cont [13/16] %v572_v21, 128  ;;  %v720_v21 = vunpack.c.0.s8 %v1802_v11 }
  0x75   : > { %588 = vxpose.xlu1.b32.cont [13/16] %v556_v22, 128 }
  0x76   : > { %v752_v32 = vcvt.s32.f32 %v720_v21  ;;  %v528_v21 = vld [vmem:[%s1790_s22 + $0x80] sm:$0xff] }
  0x78   : > { %621 = vxpose.xlu0.b32.cont [14/16] %v573_v26, 128  ;;  %v521_v26 = vld [vmem:[%s1790_s22 + $0x48] sm:$0xff] }
  0x79   : > { %589 = vxpose.xlu1.b32.cont [14/16] %v557_v27, 128  ;;  %v520_v27 = vld [vmem:[%s1790_s22 + $0x40] sm:$0xff] }
  0x7c   : > { %622 = vxpose.xlu0.b32.cont [15/16] %v574_v28, 128 }
  0x7d   : > { %590 = vxpose.xlu1.b32.cont [15/16] %v558_v29, 128 }
  0x80   : > { %623 = vxpose.xlu0.b32.end [16/16] %v575_v30, 128  ;;  %v753_v30 = vcvt.s32.f32 %v721_v20  ;;  %v529_v20 = vld [vmem:[%s1790_s22 + $0x88] sm:$0xff] }
  0x81   : > { %591 = vxpose.xlu1.b32.end [16/16] %v559_v31, 128 }
  0xc0   : > { %v624_v38 = vpop.trf.xlu0 }
  0xc1   : > { %v592_v39 = vpop.trf.xlu1  ;;  %v641_v42 = vadd.f32 %v624_v38, %v513_v36 }
  0xc2   : > { %v640_v44 = vadd.f32 %v592_v39, %v512_v37 }
  0xc3   : > { %v673_v48 = vmul.f32 0.5, %v641_v42 }
  0xc4   : > { %v672_v49 = vmul.f32 0.5, %v640_v44  ;;  %v625_v51 = vpop.trf.xlu0  ;;  %v755_v44 = vcvt.s32.f32 %v723_v34  ;;  %v531_v34 = vld [vmem:[%s1790_s22 + $0x98] sm:$0xff] }
  0xc5   : > { %v593_v53 = vpop.trf.xlu1  ;;  %v643_v57 = vadd.f32 %v625_v51, %v515_v46  ;;  %v777_v59 = vmul.f32 %v745_v45, %v673_v48  ;;  %v754_v46 = vcvt.s32.f32 %v722_v35  ;;  %v725_v48 = vunpack.c.2.s8 %v1799_v10  ;;  %v530_v35 = vld [vmem:[%s1790_s22 + $0x90] sm:$0xff] }
  0xc6   : > { %v776_v56 = vmul.f32 %v744_v43, %v672_v49  ;;  %v642_v58 = vadd.f32 %v593_v53, %v514_v47  ;;  %v724_v49 = vunpack.c.2.s8 %v1802_v11 }
  0xc7   : > { %v675_v62 = vmul.f32 0.5, %v643_v57  ;;  %920 = vmatprep.mubr.f32.mxu0 %v777_v59 }
  0xc8   : > { %v674_v63 = vmul.f32 0.5, %v642_v58  ;;  %v626_v1 = vpop.trf.xlu0  ;;  %921 = vmatmul.mubr.f32.vlgmr.msra.gmra.mxu0 %v776_v56  ;;  %v757_v58 = vcvt.s32.f32 %v725_v48  ;;  %v533_v48 = vld [vmem:[%s1790_s22 + $0xa8] sm:$0xff] }
  0xc9   : > { %v594_v3 = vpop.trf.xlu1  ;;  %v779_v6 = vmul.f32 %v747_v50, %v675_v62  ;;  %v645_v8 = vadd.f32 %v626_v1, %v517_v60  ;;  %v756_v60 = vcvt.s32.f32 %v724_v49  ;;  %v727_v62 = vunpack.c.3.s8 %v1799_v10  ;;  %v532_v49 = vld [vmem:[%s1790_s22 + $0xa0] sm:$0xff] }
  0xca   : > { %v778_v7 = vmul.f32 %v746_v52, %v674_v63  ;;  %v644_v9 = vadd.f32 %v594_v3, %v516_v61  ;;  %v726_v63 = vunpack.c.3.s8 %v1802_v11 }
  0xcb   : > { %v677_v14 = vmul.f32 0.5, %v645_v8  ;;  %925 = vmatprep.mubr.f32.mxu0 %v779_v6  ;;  %v527_v6 = vld [vmem:[%s1790_s22 + $0x78] sm:$0xff] }
  0xcc   : > { %v676_v15 = vmul.f32 0.5, %v644_v9  ;;  %v627_v17 = vpop.trf.xlu0  ;;  %926 = vmatmul.mubr.f32.gmra.mxu0 %v778_v7  ;;  %v526_v7 = vld [vmem:[%s1790_s22 + $0x70] sm:$0xff]  ;;  %v758_v10 = vcvt.s32.f32 %v726_v63 }
  0xcd   : > { %v595_v19 = vpop.trf.xlu1  ;;  %v781_v22 = vmul.f32 %v749_v0, %v677_v14  ;;  %v647_v24 = vadd.f32 %v627_v17, %v519_v12  ;;  %v759_v12 = vcvt.s32.f32 %v727_v62  ;;  %v728_v14 = vunpack.c.0.s8 %v1821_v4  ;;  %v1843_v62 = vld [vmem:[%s1783_s12 + $0x38] sm:$0xff]  ;;  %v1846_v63 = vld [vmem:[%s1783_s12 + $0x30] sm:$0xff]  ;;  %s1474_s12 = scalar_lea.vmem %s1473_s11, 4096 }
  0xce   : > { %v780_v23 = vmul.f32 %v748_v2, %v676_v15  ;;  %v646_v25 = vadd.f32 %v595_v19, %v518_v13  ;;  %v729_v15 = vunpack.c.0.s8 %v1824_v5  ;;  %p1476_p3 = scmp.lt.s32.totalorder %s1474_s12, %s1468_s10 }
  0xcf   : > { %v679_v28 = vmul.f32 0.5, %v647_v24  ;;  %930 = vmatprep.mubr.f32.mxu0 %v781_v22 }
  0xd0   : > { %v678_v29 = vmul.f32 0.5, %v646_v25  ;;  %v628_v31 = vpop.trf.xlu0  ;;  %931 = vmatmul.mubr.f32.gmra.mxu0 %v780_v23  ;;  %v760_v25 = vcvt.s32.f32 %v728_v14  ;;  %v537_v14 = vld [vmem:[%s1790_s22 + $0xc8] sm:$0xff]  ;;  %p1477_p6 = por %p1476_p3, %p1475_p2 }
  0xd1   : > { %v596_v33 = vpop.trf.xlu1  ;;  %v783_v36 = vmul.f32 %v751_v16, %v679_v28  ;;  %v649_v38 = vadd.f32 %v628_v31, %v521_v26  ;;  %v730_v28 = vunpack.c.1.s8 %v1821_v4 }
  0xd2   : > { %v782_v37 = vmul.f32 %v750_v18, %v678_v29  ;;  %v648_v39 = vadd.f32 %v596_v33, %v520_v27  ;;  %v731_v27 = vunpack.c.1.s8 %v1824_v5  ;;  %v761_v29 = vcvt.s32.f32 %v729_v15  ;;  %v536_v15 = vld [vmem:[%s1790_s22 + $0xc0] sm:$0xff]  ;;  %p1478_p7 = pnand %p1477_p6, %p1471_p1 }
  0xd3   : > { %v681_v42 = vmul.f32 0.5, %v649_v38  ;;  %935 = vmatprep.mubr.f32.mxu0 %v783_v36 }
  0xd4   : > { %v680_v43 = vmul.f32 0.5, %v648_v39  ;;  %v629_v45 = vpop.trf.xlu0  ;;  %936 = vmatmul.mubr.f32.gmra.mxu0 %v782_v37  ;;  %v763_v38 = vcvt.s32.f32 %v731_v27 }
  0xd5   : > { %v597_v47 = vpop.trf.xlu1  ;;  %v785_v50 = vmul.f32 %v753_v30, %v681_v42  ;;  %v651_v52 = vadd.f32 %v629_v45, %v523_v40  ;;  %v762_v40 = vcvt.s32.f32 %v730_v28  ;;  %v733_v42 = vunpack.c.2.s8 %v1824_v5  ;;  %v539_v28 = vld [vmem:[%s1790_s22 + $0xd8] sm:$0xff] }
  0xd6   : > { %v784_v51 = vmul.f32 %v752_v32, %v680_v43  ;;  %v650_v53 = vadd.f32 %v597_v47, %v522_v41  ;;  %v732_v43 = vunpack.c.2.s8 %v1821_v4 }
  0xd7   : > { %v683_v56 = vmul.f32 0.5, %v651_v52  ;;  %940 = vmatprep.mubr.f32.mxu0 %v785_v50  ;;  %v765_v52 = vcvt.s32.f32 %v733_v42  ;;  %v541_v42 = vld [vmem:[%s1790_s22 + $0xe8] sm:$0xff] }
  0xd8   : > { %v682_v57 = vmul.f32 0.5, %v650_v53  ;;  %v630_v59 = vpop.trf.xlu0  ;;  %941 = vmatmul.mubr.f32.gmra.mxu0 %v784_v51 }
  0xd9   : > { %v598_v61 = vpop.trf.xlu1  ;;  %v787_v0 = vmul.f32 %v755_v44, %v683_v56  ;;  %v653_v2 = vadd.f32 %v630_v59, %v525_v54  ;;  %v764_v54 = vcvt.s32.f32 %v732_v43  ;;  %v735_v56 = vunpack.c.3.s8 %v1824_v5  ;;  %v540_v43 = vld [vmem:[%s1790_s22 + $0xe0] sm:$0xff] }
  0xda   : > { %v786_v1 = vmul.f32 %v754_v46, %v682_v57  ;;  %v652_v3 = vadd.f32 %v598_v61, %v524_v55  ;;  %v734_v57 = vunpack.c.3.s8 %v1821_v4 }
  0xdb   : > { %v685_v8 = vmul.f32 0.5, %v653_v2  ;;  %945 = vmatprep.mubr.f32.mxu0 %v787_v0  ;;  %v535_v0 = vld [vmem:[%s1790_s22 + $0xb8] sm:$0xff] }
  0xdc   : > { %v684_v9 = vmul.f32 0.5, %v652_v3  ;;  %v631_v13 = vpop.trf.xlu0  ;;  %946 = vmatmul.mubr.f32.gmra.mxu0 %v786_v1  ;;  %v534_v1 = vld [vmem:[%s1790_s22 + $0xb0] sm:$0xff]  ;;  %v766_v5 = vcvt.s32.f32 %v734_v57 }
  0xdd   : > { %v599_v11 = vpop.trf.xlu1  ;;  %v789_v16 = vmul.f32 %v757_v58, %v685_v8  ;;  %v655_v18 = vadd.f32 %v631_v13, %v527_v6  ;;  %v767_v6 = vcvt.s32.f32 %v735_v56  ;;  %v737_v8 = vunpack.c.0.s8 %v1843_v62  ;;  %v543_v56 = vld [vmem:[%s1790_s22 + $0xf8] sm:$0xff]  ;;  %v542_v57 = vld [vmem:[%s1790_s22 + $0xf0] sm:$0xff] }
  0xde   : > { %v788_v17 = vmul.f32 %v756_v60, %v684_v9  ;;  %v654_v19 = vadd.f32 %v599_v11, %v526_v7  ;;  %v736_v9 = vunpack.c.0.s8 %v1846_v63 }
  0xdf   : > { %v687_v22 = vmul.f32 0.5, %v655_v18  ;;  %950 = vmatprep.mubr.f32.mxu0 %v789_v16  ;;  %v769_v18 = vcvt.s32.f32 %v737_v8 }
  0xe0   : > { %v686_v23 = vmul.f32 0.5, %v654_v19  ;;  %v632_v24 = vpop.trf.xlu0  ;;  %951 = vmatmul.mubr.f32.gmra.mxu0 %v788_v17 }
  0xe1   : > { %v600_v26 = vpop.trf.xlu1  ;;  %v791_v30 = vmul.f32 %v759_v12, %v687_v22  ;;  %v657_v32 = vadd.f32 %v632_v24, %v529_v20  ;;  %v768_v20 = vcvt.s32.f32 %v736_v9  ;;  %v739_v22 = vunpack.c.1.s8 %v1843_v62 }
  0xe2   : > { %v790_v31 = vmul.f32 %v758_v10, %v686_v23  ;;  %v656_v33 = vadd.f32 %v600_v26, %v528_v21  ;;  %v738_v23 = vunpack.c.1.s8 %v1846_v63 }
  0xe3   : > { %v689_v36 = vmul.f32 0.5, %v657_v32  ;;  %955 = vmatprep.mubr.f32.mxu0 %v791_v30  ;;  %v771_v32 = vcvt.s32.f32 %v739_v22 }
  0xe4   : > { %v688_v37 = vmul.f32 0.5, %v656_v33  ;;  %v633_v39 = vpop.trf.xlu0  ;;  %956 = vmatmul.mubr.f32.gmra.mxu0 %v790_v31 }
  0xe5   : > { %v601_v41 = vpop.trf.xlu1  ;;  %v659_v45 = vadd.f32 %v633_v39, %v531_v34  ;;  %v793_v47 = vmul.f32 %v761_v29, %v689_v36  ;;  %v538_v29 = vld [vmem:[%s1790_s22 + $0xd0] sm:$0xff]  ;;  %v770_v34 = vcvt.s32.f32 %v738_v23  ;;  %v741_v36 = vunpack.c.2.s8 %v1843_v62 }
  0xe6   : > { %v792_v44 = vmul.f32 %v760_v25, %v688_v37  ;;  %v658_v46 = vadd.f32 %v601_v41, %v530_v35  ;;  %v740_v37 = vunpack.c.2.s8 %v1846_v63 }
  0xe7   : > { %v691_v50 = vmul.f32 0.5, %v659_v45  ;;  %960 = vmatprep.mubr.f32.mxu1 %v793_v47 }
  0xe8   : > { %v690_v51 = vmul.f32 0.5, %v658_v46  ;;  %v634_v53 = vpop.trf.xlu0  ;;  %961 = vmatmul.mubr.f32.vlgmr.msra.gmra.mxu1 %v792_v44  ;;  %v773_v46 = vcvt.s32.f32 %v741_v36 }
  0xe9   : > { %v602_v55 = vpop.trf.xlu1  ;;  %v795_v58 = vmul.f32 %v763_v38, %v691_v50  ;;  %v661_v60 = vadd.f32 %v634_v53, %v533_v48  ;;  %v772_v48 = vcvt.s32.f32 %v740_v37  ;;  %v743_v50 = vunpack.c.3.s8 %v1843_v62 }
  0xea   : > { %v794_v59 = vmul.f32 %v762_v40, %v690_v51  ;;  %v660_v61 = vadd.f32 %v602_v55, %v532_v49  ;;  %v742_v51 = vunpack.c.3.s8 %v1846_v63 }
  0xeb   : > { %v693_v2 = vmul.f32 0.5, %v661_v60  ;;  %965 = vmatprep.mubr.f32.mxu1 %v795_v58  ;;  %v775_v60 = vcvt.s32.f32 %v743_v50 }
  0xec   : > { %v692_v3 = vmul.f32 0.5, %v660_v61  ;;  %v635_v7 = vpop.trf.xlu0  ;;  %966 = vmatmul.mubr.f32.gmra.mxu1 %v794_v59 }
  0xed   : > { %v603_v4 = vpop.trf.xlu1  ;;  %v797_v12 = vmul.f32 %v765_v52, %v693_v2  ;;  %v663_v10 = vadd.f32 %v635_v7, %v535_v0  ;;  %v774_v0 = vcvt.s32.f32 %v742_v51 }
  0xee   : > { %v796_v13 = vmul.f32 %v764_v54, %v692_v3  ;;  %v662_v11 = vadd.f32 %v603_v4, %v534_v1 }
  0xef   : > { %v695_v16 = vmul.f32 0.5, %v663_v10  ;;  %970 = vmatprep.mubr.f32.mxu1 %v797_v12 }
  0xf0   : > { %v694_v17 = vmul.f32 0.5, %v662_v11  ;;  %v636_v19 = vpop.trf.xlu0  ;;  %971 = vmatmul.mubr.f32.gmra.mxu1 %v796_v13 }
  0xf1   : > { %v604_v21 = vpop.trf.xlu1  ;;  %v799_v24 = vmul.f32 %v767_v6, %v695_v16  ;;  %v665_v26 = vadd.f32 %v636_v19, %v537_v14 }
  0xf2   : > { %v798_v25 = vmul.f32 %v766_v5, %v694_v17  ;;  %v664_v27 = vadd.f32 %v604_v21, %v536_v15 }
  0xf3   : > { %v697_v30 = vmul.f32 0.5, %v665_v26  ;;  %975 = vmatprep.mubr.f32.mxu1 %v799_v24 }
  0xf4   : > { %v696_v31 = vmul.f32 0.5, %v664_v27  ;;  %v637_v33 = vpop.trf.xlu0  ;;  %976 = vmatmul.mubr.f32.gmra.mxu1 %v798_v25 }
  0xf5   : > { %v605_v35 = vpop.trf.xlu1  ;;  %v801_v38 = vmul.f32 %v769_v18, %v697_v30  ;;  %v667_v40 = vadd.f32 %v637_v33, %v539_v28 }
  0xf6   : > { %v800_v39 = vmul.f32 %v768_v20, %v696_v31  ;;  %v666_v41 = vadd.f32 %v605_v35, %v538_v29 }
  0xf7   : > { %v699_v44 = vmul.f32 0.5, %v667_v40  ;;  %980 = vmatprep.mubr.f32.mxu1 %v801_v38 }
  0xf8   : > { %v698_v45 = vmul.f32 0.5, %v666_v41  ;;  %v638_v47 = vpop.trf.xlu0  ;;  %981 = vmatmul.mubr.f32.gmra.mxu1 %v800_v39 }
  0xf9   : > { %v606_v49 = vpop.trf.xlu1  ;;  %v803_v52 = vmul.f32 %v771_v32, %v699_v44  ;;  %v669_v54 = vadd.f32 %v638_v47, %v541_v42 }
  0xfa   : > { %v802_v53 = vmul.f32 %v770_v34, %v698_v45  ;;  %v668_v55 = vadd.f32 %v606_v49, %v540_v43 }
  0xfb   : > { %v701_v58 = vmul.f32 0.5, %v669_v54  ;;  %985 = vmatprep.mubr.f32.mxu1 %v803_v52 }
  0xfc   : > { %v700_v59 = vmul.f32 0.5, %v668_v55  ;;  %v639_v61 = vpop.trf.xlu0  ;;  %986 = vmatmul.mubr.f32.gmra.mxu1 %v802_v53 }
  0xfd   : > { %v607_v1 = vpop.trf.xlu1  ;;  %v805_v2 = vmul.f32 %v773_v46, %v701_v58  ;;  %v671_v62 = vadd.f32 %v639_v61, %v543_v56 }
  0xfe   : > { %v804_v3 = vmul.f32 %v772_v48, %v700_v59  ;;  %v670_v6 = vadd.f32 %v607_v1, %v542_v57 }
  0xff   : > { %v703_v63 = vmul.f32 0.5, %v671_v62  ;;  %990 = vmatprep.mubr.f32.mxu1 %v805_v2 }
 0x100   : > { %v702_v7 = vmul.f32 0.5, %v670_v6  ;;  %991 = vmatmul.mubr.f32.gmra.mxu1 %v804_v3 }
 0x101   : > { %v807_v5 = vmul.f32 %v775_v60, %v703_v63 }
 0x102   : > { %v806_v4 = vmul.f32 %v774_v0, %v702_v7 }
 0x103   : > { %995 = vmatprep.mubr.f32.mxu1 %v807_v5 }
 0x104   : > { %996 = vmatmul.mubr.f32.gmra.mxu1 %v806_v4 }
 0x188   : > { %v1291_v8 = vpop.f32.mrf.mxu0 }
 0x18a   : > { %v1292_v9 = vpop.f32.mrf.mxu0 }
 0x18b   : > { %v1293_v12 = vadd.f32 %v1292_v9, %v1291_v8 }
 0x18c   : > { %v1294_v13 = vpop.f32.mrf.mxu0 }
 0x18d   : > { %v1052_v11 = vmax.f32 %v1293_v12, 0.0 }
 0x18e   : > { %v1295_v10 = vpop.f32.mrf.mxu0 }
 0x18f   : > { %v1296_v14 = vadd.f32 %v1295_v10, %v1294_v13  ;;  %1068 = vst [vmem:[%s1867_s27] sm:$0xff] %v1052_v11 }
 0x190   : > { %v1297_v15 = vpop.f32.mrf.mxu0 }
 0x191   : > { %v1053_v17 = vmax.f32 %v1296_v14, 0.0 }
 0x192   : > { %v1298_v16 = vpop.f32.mrf.mxu0 }
 0x193   : > { %v1299_v18 = vadd.f32 %v1298_v16, %v1297_v15  ;;  %1069 = vst [vmem:[%s1867_s27 + $0x8] sm:$0xff] %v1053_v17 }
 0x194   : > { %v1300_v19 = vpop.f32.mrf.mxu0 }
 0x195   : > { %v1054_v21 = vmax.f32 %v1299_v18, 0.0 }
 0x196   : > { %v1301_v20 = vpop.f32.mrf.mxu0 }
 0x197   : > { %v1302_v22 = vadd.f32 %v1301_v20, %v1300_v19  ;;  %1070 = vst [vmem:[%s1867_s27 + $0x10] sm:$0xff] %v1054_v21 }
 0x198   : > { %v1303_v23 = vpop.f32.mrf.mxu0 }
 0x199   : > { %v1055_v25 = vmax.f32 %v1302_v22, 0.0 }
 0x19a   : > { %v1304_v24 = vpop.f32.mrf.mxu0 }
 0x19b   : > { %v1305_v26 = vadd.f32 %v1304_v24, %v1303_v23  ;;  %1071 = vst [vmem:[%s1867_s27 + $0x18] sm:$0xff] %v1055_v25 }
 0x19c   : > { %v1306_v27 = vpop.f32.mrf.mxu0 }
 0x19d   : > { %v1056_v29 = vmax.f32 %v1305_v26, 0.0 }
 0x19e   : > { %v1307_v28 = vpop.f32.mrf.mxu0 }
 0x19f   : > { %v1308_v30 = vadd.f32 %v1307_v28, %v1306_v27  ;;  %1072 = vst [vmem:[%s1867_s27 + $0x20] sm:$0xff] %v1056_v29 }
 0x1a0   : > { %v1309_v31 = vpop.f32.mrf.mxu0 }
 0x1a1   : > { %v1057_v33 = vmax.f32 %v1308_v30, 0.0 }
 0x1a2   : > { %v1310_v32 = vpop.f32.mrf.mxu0 }
 0x1a3   : > { %v1311_v34 = vadd.f32 %v1310_v32, %v1309_v31  ;;  %1073 = vst [vmem:[%s1867_s27 + $0x28] sm:$0xff] %v1057_v33 }
 0x1a4   : > { %v1312_v35 = vpop.f32.mrf.mxu0 }
 0x1a5   : > { %v1058_v37 = vmax.f32 %v1311_v34, 0.0 }
 0x1a6   : > { %v1313_v36 = vpop.f32.mrf.mxu0 }
 0x1a7   : > { %v1314_v38 = vadd.f32 %v1313_v36, %v1312_v35  ;;  %1074 = vst [vmem:[%s1867_s27 + $0x30] sm:$0xff] %v1058_v37 }
 0x1a8   : > { %v1315_v39 = vpop.f32.mrf.mxu1 }
 0x1a9   : > { %v1059_v41 = vmax.f32 %v1314_v38, 0.0 }
 0x1aa   : > { %v1316_v40 = vpop.f32.mrf.mxu1 }
 0x1ab   : > { %v1317_v42 = vadd.f32 %v1316_v40, %v1315_v39  ;;  %1075 = vst [vmem:[%s1867_s27 + $0x38] sm:$0xff] %v1059_v41 }
 0x1ac   : > { %v1318_v43 = vpop.f32.mrf.mxu1 }
 0x1ad   : > { %v1060_v45 = vmax.f32 %v1317_v42, 0.0 }
 0x1ae   : > { %v1319_v44 = vpop.f32.mrf.mxu1 }
 0x1af   : > { %v1320_v46 = vadd.f32 %v1319_v44, %v1318_v43  ;;  %1076 = vst [vmem:[%s1867_s27 + $0x40] sm:$0xff] %v1060_v45 }
 0x1b0   : > { %v1321_v47 = vpop.f32.mrf.mxu1 }
 0x1b1   : > { %v1061_v49 = vmax.f32 %v1320_v46, 0.0 }
 0x1b2   : > { %v1322_v48 = vpop.f32.mrf.mxu1 }
 0x1b3   : > { %v1323_v50 = vadd.f32 %v1322_v48, %v1321_v47  ;;  %1077 = vst [vmem:[%s1867_s27 + $0x48] sm:$0xff] %v1061_v49 }
 0x1b4   : > { %v1324_v51 = vpop.f32.mrf.mxu1 }
 0x1b5   : > { %v1062_v53 = vmax.f32 %v1323_v50, 0.0 }
 0x1b6   : > { %v1325_v52 = vpop.f32.mrf.mxu1 }
 0x1b7   : > { %v1326_v54 = vadd.f32 %v1325_v52, %v1324_v51  ;;  %1078 = vst [vmem:[%s1867_s27 + $0x50] sm:$0xff] %v1062_v53 }
 0x1b8   : > { %v1327_v55 = vpop.f32.mrf.mxu1 }
 0x1b9   : > { %v1063_v57 = vmax.f32 %v1326_v54, 0.0 }
 0x1ba   : > { %v1328_v56 = vpop.f32.mrf.mxu1 }
 0x1bb   : > { %v1329_v58 = vadd.f32 %v1328_v56, %v1327_v55  ;;  %1079 = vst [vmem:[%s1867_s27 + $0x58] sm:$0xff] %v1063_v57 }
 0x1bc   : > { %v1330_v59 = vpop.f32.mrf.mxu1 }
 0x1bd   : > { %v1064_v61 = vmax.f32 %v1329_v58, 0.0 }
 0x1be   : > { %v1331_v60 = vpop.f32.mrf.mxu1 }
 0x1bf   : > { %v1332_v0 = vadd.f32 %v1331_v60, %v1330_v59  ;;  %1080 = vst [vmem:[%s1867_s27 + $0x60] sm:$0xff] %v1064_v61 }
 0x1c0   : > { %v1333_v1 = vpop.f32.mrf.mxu1 }
 0x1c1   : > { %v1065_v3 = vmax.f32 %v1332_v0, 0.0 }
 0x1c2   : > { %v1334_v2 = vpop.f32.mrf.mxu1 }
 0x1c3   : > { %v1335_v62 = vadd.f32 %v1334_v2, %v1333_v1  ;;  %1081 = vst [vmem:[%s1867_s27 + $0x68] sm:$0xff] %v1065_v3 }
 0x1c4   : > { %v1336_v6 = vpop.f32.mrf.mxu1 }
 0x1c5   : > { %v1066_v7 = vmax.f32 %v1335_v62, 0.0 }
 0x1c6   : > { %v1337_v63 = vpop.f32.mrf.mxu1 }
 0x1c7   : > { %v1338_v5 = vadd.f32 %v1337_v63, %v1336_v6  ;;  %1082 = vst [vmem:[%s1867_s27 + $0x70] sm:$0xff] %v1066_v7 }
 0x1c9   : > { %v1067_v4 = vmax.f32 %v1338_v5, 0.0 }
 0x1cb   : > { %1083 = vst [vmem:[%s1867_s27 + $0x78] sm:$0xff] %v1067_v4 }
 0x1cc   : > { %1481 = shalt.err (!%p1478_p7)
}
 0x1cd   : > { %s1482_s13 = scalar_lea.hbm %s1889_s5, 2048  ;;  %s1486_s22 = scalar_lea.hbm %s1944_s4, 4096 }
 0x1ce   : > { %p1483_p8 = scmp.ne.s32.totalorder %s1889_s5, %s1482_s13  ;;  %p1487_p4 = scmp.lt.s32.totalorder %s1889_s5, %s1944_s4 }
 0x1cf   : > { %p1488_p11 = scmp.lt.s32.totalorder %s1486_s22, %s1482_s13 }
 0x1d0   : > { %p1484_p9 = pnand %p1483_p8, %p1951_p13 }
 0x1d1   : > { %p1489_p12 = por %p1488_p11, %p1487_p4 }
 0x1d2   : > { %p1485_p10 = pneg %p1484_p9 }
 0x1d4   : > { %p1490_p0 = pnand %p1489_p12, %p1485_p10 }
 0x1d6   : > { %1493 = shalt.err (!%p1490_p0)
}
 0x1d7   : > { %s1554_s25 = smov 128   ;;  %s1555_s8 = smov 8  }
 0x1d8   : > { %1375 = dma.vmem_to_hbm [thread:$0]  (%p1951_p13), %s1891_s7, 2048, %s1889_s5, %s1085_s9, %s1554_s25, %s1554_s25, %s1555_s8  }
 0x1d9 PF: > { %s1114_s30 = sand.u32 1, %s1528_s15   ;;  %p1952_p1 = scmp.ne.s32.totalorder %s1948_s29, 0 }
 0x1da   : > { %s1115_s10 = scalar_lea.sflag [#allocation5], %s1114_s30 }
 0x1db   : > { %p1382_p2 = pnand %p1238_p5, %p1952_p1 }
 0x1dd   : > { %p1383_p3 = pneg %p1382_p2 }
 0x1df   : > { %1523 = dma.done.wait (%p1383_p3), %s1115_s10, 2048  }
 0x1e0   : > { %1525 = vsyncadd (%p1383_p3), %s1115_s10, 4294965248  ;;  %s18_s20 = sadd.s32 1, %s1548_s20   ;;  %s1953_s15 = smov %s1532_s16 }
 0x1e1   : > { %p15_p6 = scmp.ge.s32.totalorder %s18_s20, 4   ;;  %s1954_s16 = smov %s1536_s17 }
 0x1e2   : > { %s1955_s17 = smov %s1635_s28  ;;  %s1956_s18 = smov %s1544_s19 }
 0x1e3   : > { %s1957_s19 = smov %s1959_s23  ;;  %17 = sbr.rel (!%p15_p6) target bundleno = 5 (0x5), region = 134 }
 0x1e8   :  { %1120 = vsyncpa [#allocation4], 1 }
 0x1e9   :  { %1122 = vsyncpa [#allocation4 + $0x1], 1 }
 0x1ea   :  { %1123 = vsyncpa [#allocation5], 1 }
 0x1eb   :  { %1125 = vsyncpa [#allocation5 + $0x1], 1 }

</bundles_post_ra>
